<compile_context>
chip_gen: v6e
topology: v6e:2x2x1
jax: 0.10.0
libtpu: 0.0.40
codegen_flags: <defaults>
</compile_context>

<pallas_src>
import functools

import jax
import jax.numpy as jnp
from jax import lax
from jax.experimental import pallas as pl
from jax.experimental.pallas import tpu as pltpu

_VMEM_LIMIT = 48 * 1024 * 1024  # safe on v5e/v6e (128 MiB) and v7x (64 MiB physical)


def _layernorm(v, g, b, eps=1e-5):
    mu = jnp.mean(v, axis=-1, keepdims=True)
    var = jnp.mean((v - mu) ** 2, axis=-1, keepdims=True)
    return (v - mu) * lax.rsqrt(var + eps) * g + b


def _split_heads(x2d, B, T, H, hs):
    # (B*T, H*hs) -> (H*B, T, hs); group index g = h*B + b.
    x3 = x2d.reshape(B, T, H * hs)
    return jnp.concatenate([x3[:, :, h * hs:(h + 1) * hs] for h in range(H)], axis=0)


def _merge_heads(g3, B, T, H, hs):
    # (H*B, T, hs) -> (B*T, H*hs); inverse of _split_heads.
    x3 = jnp.concatenate([g3[h * B:(h + 1) * B] for h in range(H)], axis=-1)
    return x3.reshape(B * T, H * hs)


def _decoder_kernel(n_heads,
                    emb_ref,     # (B, T, E) f32  resident seed (read at blk==0 only)
                    small_ref,   # (6, E)  f32: [ln1_g, ln1_b, b_proj, ln2_g, ln2_b, b_ff2]
                    wqkv_ref,    # (E, 3E) bf16
                    wp_ref,      # (E, E)  bf16
                    w1_ref,      # (E, Hff) bf16
                    b1_ref,      # (1, Hff) f32
                    w2_ref,      # (Hff, E) bf16
                    out_ref):    # (B, T, E) f32  carries the residual stream
    blk = pl.program_id(0)

    # Seed the residual stream from the (auto-pipelined, VMEM-resident) embeddings.
    @pl.when(blk == 0)
    def _():
        out_ref[...] = emb_ref[...]

    Bq, T, E = out_ref.shape
    H = n_heads
    hs = E // H

    x = out_ref[...].reshape(Bq * T, E)          # fold batch into the M dimension

    ln1g = small_ref[0:1, :]
    ln1b = small_ref[1:2, :]
    bp = small_ref[2:3, :]
    ln2g = small_ref[3:4, :]
    ln2b = small_ref[4:5, :]
    bff2 = small_ref[5:6, :]

    # --- LayerNorm 1 (f32), all B*T rows at once ---
    xn = _layernorm(x, ln1g, ln1b)

    # --- fused QKV projection: one bf16 MXU pass over (E, 3E), f32 accumulation ---
    qkv = jnp.dot(xn.astype(jnp.bfloat16), wqkv_ref[...],
                  preferred_element_type=jnp.float32)          # (B*T, 3E)

    # Fold 1/sqrt(hs) into Q: O(B*T*E) instead of O(B*H*T^2) on the scores.
    scale = hs ** -0.5
    q = _split_heads((qkv[:, :E] * scale).astype(jnp.bfloat16), Bq, T, H, hs)
    k = _split_heads(qkv[:, E:2 * E].astype(jnp.bfloat16), Bq, T, H, hs)
    v = _split_heads(qkv[:, 2 * E:].astype(jnp.bfloat16), Bq, T, H, hs)
    # TODO(synk): replace the H-way concat head split/merge with a single
    # pltpu.einshape relayout per direction.

    # --- batched (batch*head) causal attention; mask generated in-kernel ---
    scores = jnp.einsum('gqd,gkd->gqk', q, k,
                        preferred_element_type=jnp.float32)    # (H*B, T, T) f32
    rows = lax.broadcasted_iota(jnp.int32, (T, T), 0)
    cols = lax.broadcasted_iota(jnp.int32, (T, T), 1)
    scores = jnp.where((cols <= rows)[None, :, :], scores, jnp.float32(-1e30))
    m = jnp.max(scores, axis=-1, keepdims=True)
    e = jnp.exp(scores - m)
    denom = jnp.sum(e, axis=-1, keepdims=True)
    probs = e / denom                            # exact divide (parity with torch softmax)
    # TODO(synk): nn.Dropout(p=0.2) on attention probs omitted (eval-mode identity).
    att = jnp.einsum('gqk,gkd->gqd', probs.astype(jnp.bfloat16), v,
                     preferred_element_type=jnp.float32)       # (H*B, T, hs)
    att = _merge_heads(att, Bq, T, H, hs)                      # (B*T, E)
    # TODO(synk): for large T add a flash-style query/key tile grid axis (online
    # softmax) so the (H*B, T, T) scores never live whole in VMEM (v7x: 64 MiB).

    x = xn + (jnp.dot(att.astype(jnp.bfloat16), wp_ref[...],
                      preferred_element_type=jnp.float32) + bp)

    # --- LayerNorm 2 + feed-forward (residual base is the *normed* activation,
    #     exactly as in the torch DecoderBlock) ---
    x2 = _layernorm(x, ln2g, ln2b)
    h1 = jnp.maximum(
        jnp.dot(x2.astype(jnp.bfloat16), w1_ref[...],
                preferred_element_type=jnp.float32) + b1_ref[...], 0.0)
    ff = jnp.dot(h1.astype(jnp.bfloat16), w2_ref[...],
                 preferred_element_type=jnp.float32) + bff2
    # TODO(synk): nn.Dropout(p=0.2) in FeedForward omitted (eval-mode identity).
    # TODO(synk): on v7x, chunk the FF matmuls over Hff (pltpu.emit_pipeline) so
    # w_ff1/w_ff2 are streamed in slabs instead of held whole when E is large.
    out_ref[...] = (x2 + ff).reshape(Bq, T, E)


def _lm_head_kernel(y_ref, lnfg_ref, lnfb_ref, wh_ref, bh_ref, out_ref):
    # Final LayerNorm recomputed per vocab tile (cheap vs. the E x v_tile matmul).
    xf = _layernorm(y_ref[...], lnfg_ref[...], lnfb_ref[...])
    out_ref[...] = (jnp.dot(xf.astype(jnp.bfloat16), wh_ref[...],
                            preferred_element_type=jnp.float32) + bh_ref[...])


def gpt_forward(tokens, params, *, n_heads, n_blocks):
    """tokens: (B, T) int32. Returns logits (B, T, vocab_size) float32."""
    B, T = tokens.shape
    tok_emb = params['tok_emb']
    E = tok_emb.shape[-1]
    V = params['w_head'].shape[-1]
    Hff = params['w_ff1'].shape[-1]

    # Embedding lookups (gathers) are glue, done in plain JAX.
    emb = (tok_emb[tokens] + params['pos_emb'][:T][None, :, :]).astype(jnp.float32)

    # Pack the small per-block (1, E) params into one array -> one DMA descriptor.
    small = jnp.concatenate(
        [params['ln1_g'], params['ln1_b'], params['b_proj'],
         params['ln2_g'], params['ln2_b'], params['b_ff2']], axis=1)   # (n_blocks, 6, E)

    def blk(*dims):    # per-block stacked param, leading block axis squeezed
        return pl.BlockSpec((None,) + dims, lambda k: (k,) + (0,) * len(dims))

    # ---- kernel 1: the stack of decoder blocks ----
    # grid = (n_blocks,): each block's weights cross HBM once; M = B*T per matmul.
    y = pl.pallas_call(
        functools.partial(_decoder_kernel, n_heads),
        out_shape=jax.ShapeDtypeStruct((B, T, E), jnp.float32),
        grid_spec=pltpu.PrefetchScalarGridSpec(
            num_scalar_prefetch=0,
            grid=(n_blocks,),
            in_specs=[
                pl.BlockSpec((B, T, E), lambda k: (0, 0, 0)),   # embeddings (resident seed)
                blk(6, E),             # packed ln1 g/b, b_proj, ln2 g/b, b_ff2
                blk(E, 3 * E),         # fused Wqkv (bf16)
                blk(E, E),             # Wproj (bf16)
                blk(E, Hff),           # Wff1 (bf16)
                blk(1, Hff),           # bff1
                blk(Hff, E),           # Wff2 (bf16)
            ],
            out_specs=pl.BlockSpec((B, T, E), lambda k: (0, 0, 0)),   # carried residual
        ),
        compiler_params=pltpu.CompilerParams(
            dimension_semantics=("arbitrary",),
            vmem_limit_bytes=_VMEM_LIMIT),
    )(emb, small, params['wqkv'], params['w_proj'],
      params['w_ff1'], params['b_ff1'], params['w_ff2'])

    # ---- kernel 2: final LayerNorm + lm_head ----
    # B folded into rows; vocab tile OUTER, rows INNER -> each head-weight slab
    # (block index constant across the inner axis) is fetched once per vocab tile.
    R = B * T
    y2 = y.reshape(R, E)
    Vp = ((V + 127) // 128) * 128                 # lane-dense (128-multiple) vocab
    wh, bh = params['w_head'], params['b_head']
    if Vp != V:
        wh = jnp.pad(wh, ((0, 0), (0, Vp - V)))
        bh = jnp.pad(bh, ((0, 0), (0, Vp - V)))

    def pick_tile(n, cands):
        for c in cands:
            if n % c == 0:
                return c
        return n

    v_tile = pick_tile(Vp, (512, 256, 128))                 # lane-dense unmasked stores
    r_tile = pick_tile(R, (256, 128, 64, 32, 16, 8))

    logits = pl.pallas_call(
        _lm_head_kernel,
        out_shape=jax.ShapeDtypeStruct((R, Vp), jnp.float32),
        grid_spec=pltpu.PrefetchScalarGridSpec(
            num_scalar_prefetch=0,
            grid=(Vp // v_tile, R // r_tile),               # vocab outer, rows inner
            in_specs=[
                pl.BlockSpec((r_tile, E), lambda j, i: (i, 0)),
                pl.BlockSpec((1, E), lambda j, i: (0, 0)),
                pl.BlockSpec((1, E), lambda j, i: (0, 0)),
                pl.BlockSpec((E, v_tile), lambda j, i: (0, j)),   # constant across inner i
                pl.BlockSpec((1, v_tile), lambda j, i: (0, j)),
            ],
            out_specs=pl.BlockSpec((r_tile, v_tile), lambda j, i: (i, j)),
        ),
        compiler_params=pltpu.CompilerParams(
            dimension_semantics=("parallel", "arbitrary"),
            vmem_limit_bytes=_VMEM_LIMIT),
    )(y2, params['lnf_g'], params['lnf_b'], wh, bh)

    # TODO(synk): emit bf16 logits if downstream tolerates it (halves HBM writeback).
    return logits.reshape(B, T, Vp)[:, :, :V]


def init_params(key, *, vocab_size, context_size, n_embed, n_blocks):
    Hff = 4 * n_embed
    ks = jax.random.split(key, 7)
    bf = jnp.bfloat16

    def nrm(k, shape, scale=0.02, dtype=jnp.float32):
        return (scale * jax.random.normal(k, shape)).astype(dtype)

    return dict(
        tok_emb=nrm(ks[0], (vocab_size, n_embed), 1.0),
        pos_emb=nrm(ks[1], (context_size, n_embed), 1.0),
        ln1_g=jnp.ones((n_blocks, 1, n_embed), jnp.float32),
        ln1_b=jnp.zeros((n_blocks, 1, n_embed), jnp.float32),
        # fused [Wq | Wk | Wv]: columns [0:E]=Q, [E:2E]=K, [2E:3E]=V, heads packed
        wqkv=nrm(ks[2], (n_blocks, n_embed, 3 * n_embed), 0.1, bf),
        w_proj=nrm(ks[3], (n_blocks, n_embed, n_embed), 0.1, bf),
        b_proj=jnp.zeros((n_blocks, 1, n_embed), jnp.float32),
        ln2_g=jnp.ones((n_blocks, 1, n_embed), jnp.float32),
        ln2_b=jnp.zeros((n_blocks, 1, n_embed), jnp.float32),
        w_ff1=nrm(ks[4], (n_blocks, n_embed, Hff), 0.1, bf),
        b_ff1=jnp.zeros((n_blocks, 1, Hff), jnp.float32),
        w_ff2=nrm(ks[5], (n_blocks, Hff, n_embed), 0.1, bf),
        b_ff2=jnp.zeros((n_blocks, 1, n_embed), jnp.float32),
        lnf_g=jnp.ones((1, n_embed), jnp.float32),
        lnf_b=jnp.zeros((1, n_embed), jnp.float32),
        w_head=nrm(ks[6], (n_embed, vocab_size), 0.1, bf),
        b_head=jnp.zeros((1, vocab_size), jnp.float32),
    )


if __name__ == "__main__":
    # Small config consistent with the module defaults (n_embed=32).
    B, T = 2, 8
    n_heads, n_blocks = 4, 2
    context_size, vocab_size, n_embed = 8, 64, 32

    key = jax.random.PRNGKey(0)
    k_tok, k_param = jax.random.split(key)
    tokens = jax.random.randint(k_tok, (B, T), 0, vocab_size, dtype=jnp.int32)
    params = init_params(k_param, vocab_size=vocab_size, context_size=context_size,
                         n_embed=n_embed, n_blocks=n_blocks)

    logits = gpt_forward(tokens, params, n_heads=n_heads, n_blocks=n_blocks)
    logits = jax.block_until_ready(logits)

    assert logits.shape == (B, T, vocab_size), logits.shape
    assert bool(jnp.all(jnp.isfinite(logits)))
    print("KERNEL_OK")
</pallas_src>

<mosaic_0001>
module attributes {stable_mosaic.version = 11 : i64} {
  func.func @_decoder_kernel(%arg0: i32, %arg1: memref<2x8x32xf32, #tpu.memory_space<vmem>>, %arg2: memref<1x6x32xf32, #tpu.memory_space<vmem>>, %arg3: memref<1x32x96xbf16, #tpu.memory_space<vmem>>, %arg4: memref<1x32x32xbf16, #tpu.memory_space<vmem>>, %arg5: memref<1x32x128xbf16, #tpu.memory_space<vmem>>, %arg6: memref<1x1x128xf32, #tpu.memory_space<vmem>>, %arg7: memref<1x128x32xbf16, #tpu.memory_space<vmem>>, %arg8: memref<2x8x32xf32, #tpu.memory_space<vmem>>) attributes {dimension_semantics = [#tpu.dimension_semantics<arbitrary>], iteration_bounds = array<i64: 2>, scalar_prefetch = 0 : i64, scratch_operands = 0 : i64, tpu.core_type = #tpu.core_type<tc>, window_params = [{pipeline_mode = #tpu.pipeline_mode<synchronous>, transform_indices = @transform_0, window_bounds = array<i64: 2, 8, 32>}, {transform_indices = @transform_1, window_bounds = array<i64: 1, 6, 32>}, {transform_indices = @transform_2, window_bounds = array<i64: 1, 32, 96>}, {transform_indices = @transform_3, window_bounds = array<i64: 1, 32, 32>}, {transform_indices = @transform_4, window_bounds = array<i64: 1, 32, 128>}, {transform_indices = @transform_5, window_bounds = array<i64: 1, 1, 128>}, {transform_indices = @transform_6, window_bounds = array<i64: 1, 128, 32>}, {pipeline_mode = #tpu.pipeline_mode<synchronous>, transform_indices = @transform_7, window_bounds = array<i64: 2, 8, 32>}]} {
    %c0_i32 = arith.constant 0 : i32
    %0 = arith.cmpi eq, %arg0, %c0_i32 : i32
    %1 = arith.extui %0 : i1 to i32
    %c0_i32_0 = arith.constant 0 : i32
    %2 = arith.cmpi ne, %1, %c0_i32_0 : i32
    scf.if %2 {
      %c0_54 = arith.constant 0 : index
      %c0_55 = arith.constant 0 : index
      %c0_56 = arith.constant 0 : index
      %143 = vector.load %arg1[%c0_54, %c0_55, %c0_56] : memref<2x8x32xf32, #tpu.memory_space<vmem>>, vector<2x8x32xf32>
      %c0_57 = arith.constant 0 : index
      %c0_58 = arith.constant 0 : index
      %c0_59 = arith.constant 0 : index
      %144 = vector.load %arg8[%c0_57, %c0_58, %c0_59] : memref<2x8x32xf32, #tpu.memory_space<vmem>>, vector<2x8x32xf32>
      tpu.vector_store %arg8[%c0_57, %c0_58, %c0_59], %143 {strides = array<i32>} : memref<2x8x32xf32, #tpu.memory_space<vmem>>, vector<2x8x32xf32>,
    } else {
    }
    %c0 = arith.constant 0 : index
    %c0_1 = arith.constant 0 : index
    %c0_2 = arith.constant 0 : index
    %3 = vector.load %arg8[%c0, %c0_1, %c0_2] : memref<2x8x32xf32, #tpu.memory_space<vmem>>, vector<2x8x32xf32>
    %4 = vector.shape_cast %3 : vector<2x8x32xf32> to vector<16x32xf32>
    %c0_3 = arith.constant 0 : index
    %c0_4 = arith.constant 0 : index
    %c0_5 = arith.constant 0 : index
    %5 = vector.load %arg2[%c0_3, %c0_4, %c0_5] : memref<1x6x32xf32, #tpu.memory_space<vmem>>, vector<1x1x32xf32>
    %6 = vector.shape_cast %5 : vector<1x1x32xf32> to vector<1x32xf32>
    %c0_6 = arith.constant 0 : index
    %c1 = arith.constant 1 : index
    %c0_7 = arith.constant 0 : index
    %7 = vector.load %arg2[%c0_6, %c1, %c0_7] : memref<1x6x32xf32, #tpu.memory_space<vmem>>, vector<1x1x32xf32>
    %8 = vector.shape_cast %7 : vector<1x1x32xf32> to vector<1x32xf32>
    %c0_8 = arith.constant 0 : index
    %c2 = arith.constant 2 : index
    %c0_9 = arith.constant 0 : index
    %9 = vector.load %arg2[%c0_8, %c2, %c0_9] : memref<1x6x32xf32, #tpu.memory_space<vmem>>, vector<1x1x32xf32>
    %10 = vector.shape_cast %9 : vector<1x1x32xf32> to vector<1x32xf32>
    %c0_10 = arith.constant 0 : index
    %c3 = arith.constant 3 : index
    %c0_11 = arith.constant 0 : index
    %11 = vector.load %arg2[%c0_10, %c3, %c0_11] : memref<1x6x32xf32, #tpu.memory_space<vmem>>, vector<1x1x32xf32>
    %12 = vector.shape_cast %11 : vector<1x1x32xf32> to vector<1x32xf32>
    %c0_12 = arith.constant 0 : index
    %c4 = arith.constant 4 : index
    %c0_13 = arith.constant 0 : index
    %13 = vector.load %arg2[%c0_12, %c4, %c0_13] : memref<1x6x32xf32, #tpu.memory_space<vmem>>, vector<1x1x32xf32>
    %14 = vector.shape_cast %13 : vector<1x1x32xf32> to vector<1x32xf32>
    %c0_14 = arith.constant 0 : index
    %c5 = arith.constant 5 : index
    %c0_15 = arith.constant 0 : index
    %15 = vector.load %arg2[%c0_14, %c5, %c0_15] : memref<1x6x32xf32, #tpu.memory_space<vmem>>, vector<1x1x32xf32>
    %16 = vector.shape_cast %15 : vector<1x1x32xf32> to vector<1x32xf32>
    %cst = arith.constant dense<0.000000e+00> : vector<16xf32>
    %17 = vector.multi_reduction <add>, %4, %cst [1] : vector<16x32xf32> to vector<16xf32>
    %18 = vector.shape_cast %17 : vector<16xf32> to vector<16x1xf32>
    %cst_16 = arith.constant 3.200000e+01 : f32
    %19 = vector.broadcast %cst_16 : f32 to vector<16x1xf32>
    %20 = arith.divf %18, %19 : vector<16x1xf32>
    %21 = vector.broadcast %20 : vector<16x1xf32> to vector<16x32xf32>
    %22 = arith.subf %4, %21 : vector<16x32xf32>
    %23 = arith.mulf %22, %22 : vector<16x32xf32>
    %cst_17 = arith.constant dense<0.000000e+00> : vector<16xf32>
    %24 = vector.multi_reduction <add>, %23, %cst_17 [1] : vector<16x32xf32> to vector<16xf32>
    %25 = vector.shape_cast %24 : vector<16xf32> to vector<16x1xf32>
    %cst_18 = arith.constant 3.200000e+01 : f32
    %26 = vector.broadcast %cst_18 : f32 to vector<16x1xf32>
    %27 = arith.divf %25, %26 : vector<16x1xf32>
    %28 = vector.broadcast %20 : vector<16x1xf32> to vector<16x32xf32>
    %29 = arith.subf %4, %28 : vector<16x32xf32>
    %cst_19 = arith.constant 9.99999974E-6 : f32
    %30 = vector.broadcast %cst_19 : f32 to vector<16x1xf32>
    %31 = arith.addf %27, %30 : vector<16x1xf32>
    %32 = math.rsqrt %31 : vector<16x1xf32>
    %33 = vector.broadcast %32 : vector<16x1xf32> to vector<16x32xf32>
    %34 = arith.mulf %29, %33 : vector<16x32xf32>
    %35 = vector.broadcast %6 : vector<1x32xf32> to vector<16x32xf32>
    %36 = arith.mulf %34, %35 : vector<16x32xf32>
    %37 = vector.broadcast %8 : vector<1x32xf32> to vector<16x32xf32>
    %38 = arith.addf %36, %37 : vector<16x32xf32>
    %39 = arith.truncf %38 : vector<16x32xf32> to vector<16x32xbf16>
    %c0_20 = arith.constant 0 : index
    %c0_21 = arith.constant 0 : index
    %c0_22 = arith.constant 0 : index
    %40 = vector.load %arg3[%c0_20, %c0_21, %c0_22] : memref<1x32x96xbf16, #tpu.memory_space<vmem>>, vector<1x32x96xbf16>
    %41 = vector.shape_cast %40 : vector<1x32x96xbf16> to vector<32x96xbf16>
    %cst_23 = arith.constant dense<0.000000e+00> : vector<16x96xf32>
    %42 = tpu.matmul %39, %41, %cst_23 {dimension_numbers = #tpu.dot_dimension_numbers<[1], [0], [0], [1], [0, 0, 1, 1], [], []>} : vector<16x32xbf16>, vector<32x96xbf16>, vector<16x96xf32> -> vector<16x96xf32>
    %43 = vector.extract_strided_slice %42 {offsets = [0, 0], sizes = [16, 32], strides = [1, 1]} : vector<16x96xf32> to vector<16x32xf32>
    %cst_24 = arith.constant 0.353553385 : f32
    %44 = vector.broadcast %cst_24 : f32 to vector<16x32xf32>
    %45 = arith.mulf %43, %44 : vector<16x32xf32>
    %46 = arith.truncf %45 : vector<16x32xf32> to vector<16x32xbf16>
    %47 = vector.shape_cast %46 : vector<16x32xbf16> to vector<2x8x32xbf16>
    %48 = vector.extract_strided_slice %47 {offsets = [0, 0, 0], sizes = [2, 8, 8], strides = [1, 1, 1]} : vector<2x8x32xbf16> to vector<2x8x8xbf16>
    %49 = vector.extract_strided_slice %47 {offsets = [0, 0, 8], sizes = [2, 8, 8], strides = [1, 1, 1]} : vector<2x8x32xbf16> to vector<2x8x8xbf16>
    %50 = vector.extract_strided_slice %47 {offsets = [0, 0, 16], sizes = [2, 8, 8], strides = [1, 1, 1]} : vector<2x8x32xbf16> to vector<2x8x8xbf16>
    %51 = vector.extract_strided_slice %47 {offsets = [0, 0, 24], sizes = [2, 8, 8], strides = [1, 1, 1]} : vector<2x8x32xbf16> to vector<2x8x8xbf16>
    %52 = tpu.concatenate %48, %49, %50, %51 in 0 : vector<2x8x8xbf16>, vector<2x8x8xbf16>, vector<2x8x8xbf16>, vector<2x8x8xbf16> -> vector<8x8x8xbf16>
    %53 = vector.extract_strided_slice %42 {offsets = [0, 32], sizes = [16, 32], strides = [1, 1]} : vector<16x96xf32> to vector<16x32xf32>
    %54 = arith.truncf %53 : vector<16x32xf32> to vector<16x32xbf16>
    %55 = vector.shape_cast %54 : vector<16x32xbf16> to vector<2x8x32xbf16>
    %56 = vector.extract_strided_slice %55 {offsets = [0, 0, 0], sizes = [2, 8, 8], strides = [1, 1, 1]} : vector<2x8x32xbf16> to vector<2x8x8xbf16>
    %57 = vector.extract_strided_slice %55 {offsets = [0, 0, 8], sizes = [2, 8, 8], strides = [1, 1, 1]} : vector<2x8x32xbf16> to vector<2x8x8xbf16>
    %58 = vector.extract_strided_slice %55 {offsets = [0, 0, 16], sizes = [2, 8, 8], strides = [1, 1, 1]} : vector<2x8x32xbf16> to vector<2x8x8xbf16>
    %59 = vector.extract_strided_slice %55 {offsets = [0, 0, 24], sizes = [2, 8, 8], strides = [1, 1, 1]} : vector<2x8x32xbf16> to vector<2x8x8xbf16>
    %60 = tpu.concatenate %56, %57, %58, %59 in 0 : vector<2x8x8xbf16>, vector<2x8x8xbf16>, vector<2x8x8xbf16>, vector<2x8x8xbf16> -> vector<8x8x8xbf16>
    %61 = vector.extract_strided_slice %42 {offsets = [0, 64], sizes = [16, 32], strides = [1, 1]} : vector<16x96xf32> to vector<16x32xf32>
    %62 = arith.truncf %61 : vector<16x32xf32> to vector<16x32xbf16>
    %63 = vector.shape_cast %62 : vector<16x32xbf16> to vector<2x8x32xbf16>
    %64 = vector.extract_strided_slice %63 {offsets = [0, 0, 0], sizes = [2, 8, 8], strides = [1, 1, 1]} : vector<2x8x32xbf16> to vector<2x8x8xbf16>
    %65 = vector.extract_strided_slice %63 {offsets = [0, 0, 8], sizes = [2, 8, 8], strides = [1, 1, 1]} : vector<2x8x32xbf16> to vector<2x8x8xbf16>
    %66 = vector.extract_strided_slice %63 {offsets = [0, 0, 16], sizes = [2, 8, 8], strides = [1, 1, 1]} : vector<2x8x32xbf16> to vector<2x8x8xbf16>
    %67 = vector.extract_strided_slice %63 {offsets = [0, 0, 24], sizes = [2, 8, 8], strides = [1, 1, 1]} : vector<2x8x32xbf16> to vector<2x8x8xbf16>
    %68 = tpu.concatenate %64, %65, %66, %67 in 0 : vector<2x8x8xbf16>, vector<2x8x8xbf16>, vector<2x8x8xbf16>, vector<2x8x8xbf16> -> vector<8x8x8xbf16>
    "tpu.trace_start"() <{level = 10 : i32, message = "gqd,gkd->gqk"}> : () -> ()
    %cst_25 = arith.constant dense<0.000000e+00> : vector<8x8x8xf32>
    %69 = tpu.matmul %52, %60, %cst_25 {dimension_numbers = #tpu.dot_dimension_numbers<[2], [2], [1], [1], [0, 0, 0, 1, 1, 1], [0], [0]>} : vector<8x8x8xbf16>, vector<8x8x8xbf16>, vector<8x8x8xf32> -> vector<8x8x8xf32>
    "tpu.trace_stop"() : () -> ()
    %70 = tpu.iota {dimensions = array<i32: 0>} : vector<8x8xi32>
    %71 = tpu.iota {dimensions = array<i32: 1>} : vector<8x8xi32>
    %72 = arith.cmpi sle, %71, %70 : vector<8x8xi32>
    %73 = vector.shape_cast %72 : vector<8x8xi1> to vector<1x8x8xi1>
    %cst_26 = arith.constant -1.000000e+30 : f32
    %74 = vector.shape_cast %73 : vector<1x8x8xi1> to vector<1x8x8xi1>
    %75 = vector.broadcast %74 : vector<1x8x8xi1> to vector<8x8x8xi1>
    %76 = vector.broadcast %cst_26 : f32 to vector<8x8x8xf32>
    %77 = arith.select %75, %69, %76 : vector<8x8x8xi1>, vector<8x8x8xf32>
    %cst_27 = arith.constant dense<0xFF800000> : vector<8x8xf32>
    %78 = vector.multi_reduction <maximumf>, %77, %cst_27 [2] : vector<8x8x8xf32> to vector<8x8xf32>
    %79 = vector.shape_cast %78 : vector<8x8xf32> to vector<8x8x1xf32>
    %80 = vector.broadcast %79 : vector<8x8x1xf32> to vector<8x8x8xf32>
    %81 = arith.subf %77, %80 : vector<8x8x8xf32>
    %82 = math.exp %81 : vector<8x8x8xf32>
    %cst_28 = arith.constant dense<0.000000e+00> : vector<8x8xf32>
    %83 = vector.multi_reduction <add>, %82, %cst_28 [2] : vector<8x8x8xf32> to vector<8x8xf32>
    %84 = vector.shape_cast %83 : vector<8x8xf32> to vector<8x8x1xf32>
    %85 = vector.broadcast %84 : vector<8x8x1xf32> to vector<8x8x8xf32>
    %86 = arith.divf %82, %85 : vector<8x8x8xf32>
    %87 = arith.truncf %86 : vector<8x8x8xf32> to vector<8x8x8xbf16>
    "tpu.trace_start"() <{level = 10 : i32, message = "gqk,gkd->gqd"}> : () -> ()
    %cst_29 = arith.constant dense<0.000000e+00> : vector<8x8x8xf32>
    %88 = tpu.matmul %87, %68, %cst_29 {dimension_numbers = #tpu.dot_dimension_numbers<[2], [1], [1], [2], [0, 0, 0, 1, 1, 2], [0], [0]>} : vector<8x8x8xbf16>, vector<8x8x8xbf16>, vector<8x8x8xf32> -> vector<8x8x8xf32>
    "tpu.trace_stop"() : () -> ()
    %89 = vector.extract_strided_slice %88 {offsets = [0, 0, 0], sizes = [2, 8, 8], strides = [1, 1, 1]} : vector<8x8x8xf32> to vector<2x8x8xf32>
    %90 = vector.extract_strided_slice %88 {offsets = [2, 0, 0], sizes = [2, 8, 8], strides = [1, 1, 1]} : vector<8x8x8xf32> to vector<2x8x8xf32>
    %91 = vector.extract_strided_slice %88 {offsets = [4, 0, 0], sizes = [2, 8, 8], strides = [1, 1, 1]} : vector<8x8x8xf32> to vector<2x8x8xf32>
    %92 = vector.extract_strided_slice %88 {offsets = [6, 0, 0], sizes = [2, 8, 8], strides = [1, 1, 1]} : vector<8x8x8xf32> to vector<2x8x8xf32>
    %93 = tpu.concatenate %89, %90, %91, %92 in 2 : vector<2x8x8xf32>, vector<2x8x8xf32>, vector<2x8x8xf32>, vector<2x8x8xf32> -> vector<2x8x32xf32>
    %94 = vector.shape_cast %93 : vector<2x8x32xf32> to vector<16x32xf32>
    %95 = arith.truncf %94 : vector<16x32xf32> to vector<16x32xbf16>
    %c0_30 = arith.constant 0 : index
    %c0_31 = arith.constant 0 : index
    %c0_32 = arith.constant 0 : index
    %96 = vector.load %arg4[%c0_30, %c0_31, %c0_32] : memref<1x32x32xbf16, #tpu.memory_space<vmem>>, vector<1x32x32xbf16>
    %97 = vector.shape_cast %96 : vector<1x32x32xbf16> to vector<32x32xbf16>
    %cst_33 = arith.constant dense<0.000000e+00> : vector<16x32xf32>
    %98 = tpu.matmul %95, %97, %cst_33 {dimension_numbers = #tpu.dot_dimension_numbers<[1], [0], [0], [1], [0, 0, 1, 1], [], []>} : vector<16x32xbf16>, vector<32x32xbf16>, vector<16x32xf32> -> vector<16x32xf32>
    %99 = vector.broadcast %10 : vector<1x32xf32> to vector<16x32xf32>
    %100 = arith.addf %98, %99 : vector<16x32xf32>
    %101 = arith.addf %38, %100 : vector<16x32xf32>
    %cst_34 = arith.constant dense<0.000000e+00> : vector<16xf32>
    %102 = vector.multi_reduction <add>, %101, %cst_34 [1] : vector<16x32xf32> to vector<16xf32>
    %103 = vector.shape_cast %102 : vector<16xf32> to vector<16x1xf32>
    %cst_35 = arith.constant 3.200000e+01 : f32
    %104 = vector.broadcast %cst_35 : f32 to vector<16x1xf32>
    %105 = arith.divf %103, %104 : vector<16x1xf32>
    %106 = vector.broadcast %105 : vector<16x1xf32> to vector<16x32xf32>
    %107 = arith.subf %101, %106 : vector<16x32xf32>
    %108 = arith.mulf %107, %107 : vector<16x32xf32>
    %cst_36 = arith.constant dense<0.000000e+00> : vector<16xf32>
    %109 = vector.multi_reduction <add>, %108, %cst_36 [1] : vector<16x32xf32> to vector<16xf32>
    %110 = vector.shape_cast %109 : vector<16xf32> to vector<16x1xf32>
    %cst_37 = arith.constant 3.200000e+01 : f32
    %111 = vector.broadcast %cst_37 : f32 to vector<16x1xf32>
    %112 = arith.divf %110, %111 : vector<16x1xf32>
    %113 = vector.broadcast %105 : vector<16x1xf32> to vector<16x32xf32>
    %114 = arith.subf %101, %113 : vector<16x32xf32>
    %cst_38 = arith.constant 9.99999974E-6 : f32
    %115 = vector.broadcast %cst_38 : f32 to vector<16x1xf32>
    %116 = arith.addf %112, %115 : vector<16x1xf32>
    %117 = math.rsqrt %116 : vector<16x1xf32>
    %118 = vector.broadcast %117 : vector<16x1xf32> to vector<16x32xf32>
    %119 = arith.mulf %114, %118 : vector<16x32xf32>
    %120 = vector.broadcast %12 : vector<1x32xf32> to vector<16x32xf32>
    %121 = arith.mulf %119, %120 : vector<16x32xf32>
    %122 = vector.broadcast %14 : vector<1x32xf32> to vector<16x32xf32>
    %123 = arith.addf %121, %122 : vector<16x32xf32>
    %124 = arith.truncf %123 : vector<16x32xf32> to vector<16x32xbf16>
    %c0_39 = arith.constant 0 : index
    %c0_40 = arith.constant 0 : index
    %c0_41 = arith.constant 0 : index
    %125 = vector.load %arg5[%c0_39, %c0_40, %c0_41] : memref<1x32x128xbf16, #tpu.memory_space<vmem>>, vector<1x32x128xbf16>
    %126 = vector.shape_cast %125 : vector<1x32x128xbf16> to vector<32x128xbf16>
    %cst_42 = arith.constant dense<0.000000e+00> : vector<16x128xf32>
    %127 = tpu.matmul %124, %126, %cst_42 {dimension_numbers = #tpu.dot_dimension_numbers<[1], [0], [0], [1], [0, 0, 1, 1], [], []>} : vector<16x32xbf16>, vector<32x128xbf16>, vector<16x128xf32> -> vector<16x128xf32>
    %c0_43 = arith.constant 0 : index
    %c0_44 = arith.constant 0 : index
    %c0_45 = arith.constant 0 : index
    %128 = vector.load %arg6[%c0_43, %c0_44, %c0_45] : memref<1x1x128xf32, #tpu.memory_space<vmem>>, vector<1x1x128xf32>
    %129 = vector.shape_cast %128 : vector<1x1x128xf32> to vector<1x128xf32>
    %130 = vector.broadcast %129 : vector<1x128xf32> to vector<16x128xf32>
    %131 = arith.addf %127, %130 : vector<16x128xf32>
    %cst_46 = arith.constant 0.000000e+00 : f32
    %132 = vector.broadcast %cst_46 : f32 to vector<16x128xf32>
    %133 = arith.maximumf %131, %132 : vector<16x128xf32>
    %134 = arith.truncf %133 : vector<16x128xf32> to vector<16x128xbf16>
    %c0_47 = arith.constant 0 : index
    %c0_48 = arith.constant 0 : index
    %c0_49 = arith.constant 0 : index
    %135 = vector.load %arg7[%c0_47, %c0_48, %c0_49] : memref<1x128x32xbf16, #tpu.memory_space<vmem>>, vector<1x128x32xbf16>
    %136 = vector.shape_cast %135 : vector<1x128x32xbf16> to vector<128x32xbf16>
    %cst_50 = arith.constant dense<0.000000e+00> : vector<16x32xf32>
    %137 = tpu.matmul %134, %136, %cst_50 {dimension_numbers = #tpu.dot_dimension_numbers<[1], [0], [0], [1], [0, 0, 1, 1], [], []>} : vector<16x128xbf16>, vector<128x32xbf16>, vector<16x32xf32> -> vector<16x32xf32>
    %138 = vector.broadcast %16 : vector<1x32xf32> to vector<16x32xf32>
    %139 = arith.addf %137, %138 : vector<16x32xf32>
    %140 = arith.addf %123, %139 : vector<16x32xf32>
    %141 = vector.shape_cast %140 : vector<16x32xf32> to vector<2x8x32xf32>
    %c0_51 = arith.constant 0 : index
    %c0_52 = arith.constant 0 : index
    %c0_53 = arith.constant 0 : index
    %142 = vector.load %arg8[%c0_51, %c0_52, %c0_53] : memref<2x8x32xf32, #tpu.memory_space<vmem>>, vector<2x8x32xf32>
    tpu.vector_store %arg8[%c0_51, %c0_52, %c0_53], %141 {strides = array<i32>} : memref<2x8x32xf32, #tpu.memory_space<vmem>>, vector<2x8x32xf32>,
    return
  }
  func.func @transform_0(%arg0: i32) -> (i32, i32, i32) {
    %c0_i32 = arith.constant 0 : i32
    %c0_i32_0 = arith.constant 0 : i32
    %c0_i32_1 = arith.constant 0 : i32
    %c0_i32_2 = arith.constant 0 : i32
    return %c0_i32, %c0_i32_0, %c0_i32_1 : i32, i32, i32
  }
  func.func @transform_1(%arg0: i32) -> (i32, i32, i32) {
    %c0_i32 = arith.constant 0 : i32
    %c0_i32_0 = arith.constant 0 : i32
    %c0_i32_1 = arith.constant 0 : i32
    return %arg0, %c0_i32, %c0_i32_0 : i32, i32, i32
  }
  func.func @transform_2(%arg0: i32) -> (i32, i32, i32) {
    %c0_i32 = arith.constant 0 : i32
    %c0_i32_0 = arith.constant 0 : i32
    %c0_i32_1 = arith.constant 0 : i32
    return %arg0, %c0_i32, %c0_i32_0 : i32, i32, i32
  }
  func.func @transform_3(%arg0: i32) -> (i32, i32, i32) {
    %c0_i32 = arith.constant 0 : i32
    %c0_i32_0 = arith.constant 0 : i32
    %c0_i32_1 = arith.constant 0 : i32
    return %arg0, %c0_i32, %c0_i32_0 : i32, i32, i32
  }
  func.func @transform_4(%arg0: i32) -> (i32, i32, i32) {
    %c0_i32 = arith.constant 0 : i32
    %c0_i32_0 = arith.constant 0 : i32
    %c0_i32_1 = arith.constant 0 : i32
    return %arg0, %c0_i32, %c0_i32_0 : i32, i32, i32
  }
  func.func @transform_5(%arg0: i32) -> (i32, i32, i32) {
    %c0_i32 = arith.constant 0 : i32
    %c0_i32_0 = arith.constant 0 : i32
    %c0_i32_1 = arith.constant 0 : i32
    return %arg0, %c0_i32, %c0_i32_0 : i32, i32, i32
  }
  func.func @transform_6(%arg0: i32) -> (i32, i32, i32) {
    %c0_i32 = arith.constant 0 : i32
    %c0_i32_0 = arith.constant 0 : i32
    %c0_i32_1 = arith.constant 0 : i32
    return %arg0, %c0_i32, %c0_i32_0 : i32, i32, i32
  }
  func.func @transform_7(%arg0: i32) -> (i32, i32, i32) {
    %c0_i32 = arith.constant 0 : i32
    %c0_i32_0 = arith.constant 0 : i32
    %c0_i32_1 = arith.constant 0 : i32
    %c0_i32_2 = arith.constant 0 : i32
    return %c0_i32, %c0_i32_0, %c0_i32_1 : i32, i32, i32
  }
}

</mosaic_0001>

<bundles_post_ra>
// kernel: tpu_custom_call.1
= control target key start
LH: loop header
LB: loop body
LE: loop exit
PB: predicated region body
PF: predicated region fallthrough
CT: control target
= control target key end

     0   :  { %12 = vsyncpa [#allocation3], 0  ;;  %s2281_s24 = smov 0   ;;  %s2651_s0 = inlined_call_operand.vmem [shape: f32[2,8,32], index: 0, kind: input, shape index: {}]   ;;  %s2652_s1 = inlined_call_operand.vmem [shape: f32[2,6,32], index: 1, kind: input, shape index: {}]   ;;  %s2653_s2 = inlined_call_operand.vmem [shape: bf16[2,32,96], index: 2, kind: input, shape index: {}]   ;;  %s2654_s3 = inlined_call_operand.vmem [shape: bf16[2,32,32], index: 3, kind: input, shape index: {}]   ;;  %s2655_s4 = inlined_call_operand.vmem [shape: bf16[2,32,128], index: 4, kind: input, shape index: {}]   ;;  %s2656_s5 = inlined_call_operand.vmem [shape: f32[2,1,128], index: 5, kind: input, shape index: {}]   ;;  %s2657_s6 = inlined_call_operand.vmem [shape: bf16[2,128,32], index: 6, kind: input, shape index: {}]   ;;  %s2658_s7 = inlined_call_operand.hbm [shape: f32[2,8,32], index: 7, kind: output, shape index: {}]  }
   0x1 LB: > { %s2287_s25 = sadd.s32 4294967295, %s2227_s24   ;;  %p1835_p0 = scmp.ge.s32.totalorder %s2227_s24, 1  ;;  %s2227_s24 = sphi %s2281_s24, %s18_s24  }
   0x2   : > { %p280_p1 = scmp.lt.s32.totalorder %s2227_s24, 3 }
   0x4   : > { %p281_p2 = pnand %p1835_p0, %p280_p1 }
   0x5   : > { %p329_p3 = scmp.lt.s32.totalorder (!%p281_p2), %s2287_s25, 1  ;;  %p1845_p4 = scmp.ne.s32.totalorder (!%p281_p2), %s2287_s25, 0 }
   0x6   : > { %284 = sbr.rel (%p281_p2) target bundleno = 2593 (0xa21), region = 48 }
   0xb   : > { %s2293_s26 = scalar_select %p329_p3, %s2287_s25, 1 }
   0xd   : > { %s1836_s27 = sshll.u32 %s2293_s26, 3  ;;  %s1900_s28 = sshll.u32 %s2293_s26, 4 }
   0xe   : > { %s2300_s8 = scalar_lea.vmem %s2652_s1, %s1836_s27  ;;  %s2305_s11 = scalar_lea.vmem %s2653_s2, %s1900_s28 }
   0xf   : > { %s2310_s14 = scalar_lea.vmem %s2654_s3, %s1900_s28  ;;  %s2315_s17 = scalar_lea.vmem %s2655_s4, %s1900_s28 }
  0x10   : > { %s350_s20 = scalar_lea.vmem %s2656_s5, %s2293_s26  ;;  %s1903_s21 = sshll.u32 %s2293_s26, 6 }
  0x11   : > { %s2325_s27 = scalar_lea.vmem %s2657_s6, %s1903_s21  ;;  %360 = sbr.rel (%p1845_p4) target bundleno = 24 (0x18), region = 52 }
  0x16   : > { %v361_v0 = vld [vmem:[%s2651_s0] sm:$0xff]  ;;  %vm363_vm0 = vcmask 261120   ;;  %v362_v1 = vld [vmem:[%s2651_s0 + $0x8] sm:$0xff] }
  0x17   : > { %364 = vst.msk [vmem:[#allocation2] sm:$0xff] %vm363_vm0, %v361_v0  ;;  %365 = vst.msk [vmem:[#allocation2 + $0x8] sm:$0xff] %vm363_vm0, %v362_v1 }
  0x18 PF: > { %vm374_vm1 = vcmask 261120   ;;  %v2139_v16 = vld [vmem:[%s2305_s11 + $0x8] sm:$0xff]   ;;  %v2229_v17 = vmov 0.0   ;;  %vm2230_vm2 = vmmov 0   ;;  %v2140_v18 = vld [vmem:[%s2305_s11] sm:$0xff]   ;;  %s2231_s10 = smov 120  }
  0x19   : > { %1958 = vmatprep.subr.bf16.mxu0 %v2229_v17  ;;  %1962 = vmatprep.mubr.msk.bf16.mxu0 %vm2230_vm2, %v2229_v17  ;;  %v1846_v27 = vld [vmem:[%s2300_s8] ss:$0 sm:$0xff]  ;;  %v1847_v31 = vld [vmem:[%s2300_s8 + $0x1] ss:$0 sm:$0xff]  ;;  %s2232_s11 = smov 104   ;;  %s2233_s12 = smov 96  }
  0x1a   : > { %1959 = vmatpush3.bf16.msra.mxu0 %v2139_v16  ;;  %1978 = vmatprep.subr.bf16.mxu1 %v2229_v17  ;;  %s2234_s13 = smov 112   ;;  %vm515_vm3 = vcmask 64512   ;;  %v910_v16 = vlaneseq  ;;  %s2235_s15 = smov 64   ;;  %vm1026_vm5 = vcmask 1043456   ;;  %vm1432_vm6 = vcmask 130048  }
  0x1b   : > { %1960 = vmatprep.subr.bf16.mxu0 %v2229_v17  ;;  %1980 = vmatprep.mubr.msk.bf16.mxu1 %vm2230_vm2, %v2229_v17  ;;  %s2236_s16 = smov 8   ;;  %s2237_s18 = smov 16   ;;  %vm1435_vm7 = vcmask 195584  }
  0x1c   : > { %s2238_s19 = smov 24   ;;  %s2239_s26 = smov [#allocation2]  }
  0x1d   : > { %p2102_p5 = scmp.eq.s32.totalorder %s2287_s25, 1 }
  0x1e   : > { %v366_v2 = vld [vmem:[#allocation2] sm:$0xff]  ;;  %v367_v3 = vld [vmem:[#allocation2 + $0x8] sm:$0xff]  ;;  %1961 = vmatpush3.bf16.msra.mxu0 %v2140_v18  ;;  %v911_v18 = vshrl.u32 %v910_v16, 7 }
  0x1f   : > { %v375_v4 = vsel %vm374_vm1, %v366_v2, 0.0  ;;  %v378_v5 = vsel %vm374_vm1, %v367_v3, 0.0  ;;  %1966 = vmatprep.subr.bf16.mxu0 %v2229_v17 }
  0x20   : > { %376 = vadd.xlane.f32.xlu0 %v375_v4 }
  0x24   : > { %379 = vadd.xlane.f32.xlu0 %v378_v5 }
  0xa9   : > { %v377_v6 = vpop.xlane.xlu0 %376 }
  0xaa   : > { %v382_v7 = vmul.f32 0.03125, %v377_v6 }
  0xac   : > { %v384_v8 = vsub.f32 %v366_v2, %v382_v7 }
  0xad   : > { %v380_v9 = vpop.xlane.xlu0 %379 }
  0xae   : > { %v383_v10 = vmul.f32 0.03125, %v380_v9  ;;  %v386_v11 = vmul.f32 %v384_v8, %v384_v8 }
  0xb0   : > { %v385_v12 = vsub.f32 %v367_v3, %v383_v10  ;;  %v388_v13 = vsel %vm374_vm1, %v386_v11, 0.0 }
  0xb1   : > { %389 = vadd.xlane.f32.xlu1 %v388_v13 }
  0xb2   : > { %v387_v14 = vmul.f32 %v385_v12, %v385_v12 }
  0xb4   : > { %v391_v15 = vsel %vm374_vm1, %v387_v14, 0.0 }
  0xb5   : > { %392 = vadd.xlane.f32.xlu1 %v391_v15 }
 0x13a   : > { %v390_v19 = vpop.xlane.xlu1 %389 }
 0x13b   : > { %v394_v20 = vmul.f32 0.03125, %v390_v19  ;;  %v913_v19 = vand.u32 127, %v910_v16 }
 0x13d   : > { %v396_v21 = vadd.f32 1e-05, %v394_v20  ;;  %vm2449_vm4 = vcmp.le.s32.totalorder %v913_v19, %v911_v18 }
 0x13e   : > { %v393_v22 = vpop.xlane.xlu1 %392 }
 0x13f   : > { %2153 = vrsqrt.f32 %v396_v21  ;;  %v395_v23 = vmul.f32 0.03125, %v393_v22 }
 0x141   : > { %v397_v24 = vadd.f32 1e-05, %v395_v23 }
 0x143   : > { %2155 = vrsqrt.f32 %v397_v24 }
 0x14c   : > { %v2154_v25 = vpop.eup %2153 }
 0x14d   : > { %v400_v26 = vmul.f32 %v2154_v25, %v384_v8 }
 0x14f   : > { %v406_v30 = vmul.f32 %v1846_v27, %v400_v26 }
 0x150   : > { %v2156_v28 = vpop.eup %2155 }
 0x151   : > { %v401_v29 = vmul.f32 %v2156_v28, %v385_v12  ;;  %v2350_v33 = vadd.f32 %v1847_v31, %v406_v30 }
 0x153   : > { %v407_v32 = vmul.f32 %v1846_v27, %v401_v29 }
 0x155   : > { %v2352_v34 = vadd.f32 %v1847_v31, %v407_v32 }
 0x157   : > { %v414_v35 = vpack.c.bf16 %v2352_v34, %v2350_v33 }
 0x159   : > { %1963 = vmatmul.mubr.msk.bf16.vlgmr.msra.gmra.mxu0 %vm374_vm1, %v414_v35 }
 0x15a   : > { %1968 = vmatprep.mubr.msk.bf16.mxu0 %vm2230_vm2, %v2229_v17 }
 0x219   : > { %v468_v36 = vpop.f32.mrf.mxu0 }
 0x21a   : > { %v2359_v37 = vpack.c.bf16 %v468_v36, %v468_v36  ;;  %v475_v43 = vmul.f32 0.35355338, %v468_v36 }
 0x21b   : > { %v1964_v38 = vpop.f32.mrf.mxu0 }
 0x21c   : > { %501 = vrot.lane.b32.xlu0 %v2359_v37, %s2231_s10  ;;  %v1904_v47 = vpack.c.bf16 %v475_v43, %v475_v43 }
 0x21d   : > { %v471_v39 = vpop.f32.mrf.mxu0 }
 0x21e   : > { %v2363_v40 = vpack.c.bf16 %v471_v39, %v471_v39  ;;  %v476_v48 = vmul.f32 0.35355338, %v471_v39 }
 0x21f   : > { %v1965_v41 = vpop.f32.mrf.mxu0 }
 0x220   : > { %509 = vrot.lane.b32.xlu0 %v2359_v37, %s2232_s11  ;;  %503 = vrot.lane.b32.xlu1 %v2363_v40, %s2231_s10  ;;  %v1905_v52 = vpack.c.bf16 %v476_v48, %v476_v48 }
 0x224   : > { %513 = vrot.lane.b32.xlu0 %v2359_v37, %s2233_s12  ;;  %505 = vrot.lane.b32.xlu1 %v2359_v37, %s2234_s13 }
 0x228   : > { %507 = vrot.lane.b32.xlu1 %v2363_v40, %s2234_s13 }
 0x22c   : > { %511 = vrot.lane.b32.xlu1 %v2363_v40, %s2232_s11 }
 0x230   : > { %562 = vrot.lane.b32.xlu1 %v2363_v40, %s2233_s12 }
 0x28e   : > { %v502_v42 = vpop.permute.xlu0 %501 }
 0x28f   : > { %v2379_v44 = vcombine.low %v502_v42, %v502_v42 }
 0x291   : > { %612 = vrot.lane.b32.xlu0 %v2379_v44, %s2233_s12 }
 0x292   : > { %v510_v45 = vpop.permute.xlu0 %509  ;;  %v504_v46 = vpop.permute.xlu1 %503 }
 0x293   : > { %v2383_v49 = vcombine.low %v504_v46, %v504_v46  ;;  %v2400_v58 = vcombine.low %v510_v45, %v510_v45 }
 0x295   : > { %483 = vrot.lane.b32.xlu0 %v1904_v47, %s2231_s10  ;;  %662 = vrot.lane.b32.xlu1 %v2383_v49, %s2233_s12 }
 0x296   : > { %v514_v50 = vpop.permute.xlu0 %513  ;;  %v506_v51 = vpop.permute.xlu1 %505 }
 0x297   : > { %v520_v53 = vsel %vm515_vm3, %v514_v50, 0  ;;  %v2389_v54 = vcombine.low %v506_v51, %v506_v51 }
 0x298   : > { %1967 = vmatpush3.bf16.xpose.msra.mxu0 %v520_v53 }
 0x299   : > { %712 = vrot.lane.b32.xlu0 %v2389_v54, %s2233_s12  ;;  %485 = vrot.lane.b32.xlu1 %v1905_v52, %s2231_s10 }
 0x29a   : > { %v508_v55 = vpop.permute.xlu1 %507  ;;  %1972 = vmatprep.subr.bf16.mxu0 %v2229_v17 }
 0x29b   : > { %v2395_v56 = vcombine.low %v508_v55, %v508_v55 }
 0x29d   : > { %487 = vrot.lane.b32.xlu0 %v1904_v47, %s2234_s13  ;;  %762 = vrot.lane.b32.xlu1 %v2395_v56, %s2233_s12 }
 0x29e   : > { %v512_v57 = vpop.permute.xlu1 %511 }
 0x29f   : > { %1969 = vmatmul.mubr.msk.bf16.vlgmr.msra.gmra.mxu0 %vm515_vm3, %v1904_v47  ;;  %v2408_v60 = vcombine.low %v512_v57, %v512_v57 }
 0x2a0   : > { %1974 = vmatprep.mubr.msk.bf16.mxu0 %vm2230_vm2, %v2229_v17 }
 0x2a1   : > { %812 = vrot.lane.b32.xlu0 %v2400_v58, %s2233_s12  ;;  %489 = vrot.lane.b32.xlu1 %v1905_v52, %s2234_s13 }
 0x2a2   : > { %v563_v59 = vpop.permute.xlu1 %562 }
 0x2a3   : > { %v568_v61 = vsel %vm515_vm3, %v563_v59, 0 }
 0x2a4   : > { %1973 = vmatpush3.bf16.xpose.msra.mxu0 %v568_v61 }
 0x2a5   : > { %491 = vrot.lane.b32.xlu0 %v1904_v47, %s2232_s11  ;;  %862 = vrot.lane.b32.xlu1 %v2408_v60, %s2233_s12 }
 0x2a6   : > { %1984 = vmatprep.subr.bf16.mxu0 %v2229_v17 }
 0x2a9   : > { %493 = vrot.lane.b32.xlu1 %v1905_v52, %s2232_s11 }
 0x2ab   : > { %1975 = vmatmul.mubr.msk.bf16.vlgmr.msra.gmra.mxu0 %vm515_vm3, %v1905_v52 }
 0x2ac   : > { %1986 = vmatprep.mubr.msk.bf16.mxu0 %vm2230_vm2, %v2229_v17 }
 0x303   : > { %v613_v62 = vpop.permute.xlu0 %612 }
 0x304   : > { %v618_v63 = vsel %vm515_vm3, %v613_v62, 0 }
 0x305   : > { %1979 = vmatpush3.bf16.xpose.msra.mxu1 %v618_v63 }
 0x306   : > { %1990 = vmatprep.subr.bf16.mxu1 %v2229_v17 }
 0x307   : > { %v484_v0 = vpop.permute.xlu0 %483  ;;  %v663_v1 = vpop.permute.xlu1 %662 }
 0x308   : > { %v668_v2 = vsel %vm515_vm3, %v663_v1, 0 }
 0x309   : > { %1985 = vmatpush3.bf16.xpose.msra.mxu0 %v668_v2 }
 0x30a   : > { %1996 = vmatprep.subr.bf16.mxu0 %v2229_v17 }
 0x30b   : > { %v713_v3 = vpop.permute.xlu0 %712  ;;  %v486_v4 = vpop.permute.xlu1 %485 }
 0x30c   : > { %v718_v5 = vsel %vm515_vm3, %v713_v3, 0  ;;  %1981 = vmatmul.mubr.msk.bf16.vlgmr.msra.gmra.mxu1 %vm515_vm3, %v484_v0 }
 0x30d   : > { %1991 = vmatpush3.bf16.xpose.msra.mxu1 %v718_v5  ;;  %1992 = vmatprep.mubr.msk.bf16.mxu1 %vm2230_vm2, %v2229_v17 }
 0x30e   : > { %2002 = vmatprep.subr.bf16.mxu1 %v2229_v17 }
 0x30f   : > { %v488_v6 = vpop.permute.xlu0 %487  ;;  %v763_v7 = vpop.permute.xlu1 %762 }
 0x310   : > { %v768_v8 = vsel %vm515_vm3, %v763_v7, 0  ;;  %1987 = vmatmul.mubr.msk.bf16.vlgmr.msra.gmra.mxu0 %vm515_vm3, %v486_v4 }
 0x311   : > { %1997 = vmatpush3.bf16.xpose.msra.mxu0 %v768_v8  ;;  %1998 = vmatprep.mubr.msk.bf16.mxu0 %vm2230_vm2, %v2229_v17 }
 0x312   : > { %2008 = vmatprep.subr.bf16.mxu0 %v2229_v17 }
 0x313   : > { %v813_v9 = vpop.permute.xlu0 %812  ;;  %v490_v10 = vpop.permute.xlu1 %489 }
 0x314   : > { %v818_v11 = vsel %vm515_vm3, %v813_v9, 0  ;;  %1993 = vmatmul.mubr.msk.bf16.vlgmr.msra.gmra.mxu1 %vm515_vm3, %v488_v6 }
 0x315   : > { %2003 = vmatpush3.bf16.xpose.msra.mxu1 %v818_v11  ;;  %2004 = vmatprep.mubr.msk.bf16.mxu1 %vm2230_vm2, %v2229_v17 }
 0x316   : > { %2014 = vmatprep.subr.bf16.mxu1 %v2229_v17 }
 0x317   : > { %v863_v12 = vpop.permute.xlu1 %862  ;;  %v492_v14 = vpop.permute.xlu0 %491 }
 0x318   : > { %v868_v13 = vsel %vm515_vm3, %v863_v12, 0  ;;  %1999 = vmatmul.mubr.msk.bf16.vlgmr.msra.gmra.mxu0 %vm515_vm3, %v490_v10 }
 0x319   : > { %2009 = vmatpush3.bf16.xpose.msra.mxu0 %v868_v13  ;;  %2010 = vmatprep.mubr.msk.bf16.mxu0 %vm2230_vm2, %v2229_v17 }
 0x31a   : > { %2020 = vmatprep.subr.bf16.mxu0 %v2229_v17 }
 0x31b   : > { %v494_v15 = vpop.permute.xlu1 %493 }
 0x31c   : > { %2005 = vmatmul.mubr.msk.bf16.vlgmr.msra.gmra.mxu1 %vm515_vm3, %v492_v14 }
 0x31d   : > { %2016 = vmatprep.mubr.msk.bf16.mxu1 %vm2230_vm2, %v2229_v17 }
 0x320   : > { %2011 = vmatmul.mubr.msk.bf16.vlgmr.msra.gmra.mxu0 %vm515_vm3, %v494_v15 }
 0x321   : > { %2022 = vmatprep.mubr.msk.bf16.mxu0 %vm2230_vm2, %v2229_v17 }
 0x35f   : > { %v556_v21 = vpop.f32.mrf.mxu0 }
 0x360   : > { %v917_v22 = vsel %vm2449_vm4, %v556_v21, -1e+30 }
 0x361   : > { %v1970_v23 = vpop.f32.mrf.mxu0  ;;  %v925_v24 = vsel %vm515_vm3, %v917_v22, -inf }
 0x362   : > { %926 = vmax.xlane.f32.xlu0 %v925_v24 }
 0x363   : > { %v559_v25 = vpop.f32.mrf.mxu0 }
 0x365   : > { %v1971_v26 = vpop.f32.mrf.mxu0 }
 0x36b   : > { %v604_v27 = vpop.f32.mrf.mxu0 }
 0x36c   : > { %v918_v28 = vsel %vm2449_vm4, %v604_v27, -1e+30 }
 0x36d   : > { %v1976_v29 = vpop.f32.mrf.mxu0  ;;  %v928_v30 = vsel %vm515_vm3, %v918_v28, -inf }
 0x36e   : > { %929 = vmax.xlane.f32.xlu1 %v928_v30 }
 0x36f   : > { %v607_v31 = vpop.f32.mrf.mxu0 }
 0x371   : > { %v1977_v32 = vpop.f32.mrf.mxu0 }
 0x3cc   : > { %v654_v35 = vpop.f32.mrf.mxu1 }
 0x3cd   : > { %v2461_v36 = vsel %vm2449_vm4, %v654_v35, -1e+30 }
 0x3ce   : > { %v1982_v38 = vpop.f32.mrf.mxu1  ;;  %v931_v39 = vsel %vm515_vm3, %v2461_v36, -inf }
 0x3cf   : > { %932 = vmax.xlane.f32.xlu0 %v931_v39 }
 0x3d0   : > { %v657_v41 = vpop.f32.mrf.mxu1  ;;  %v704_v42 = vpop.f32.mrf.mxu0 }
 0x3d1   : > { %v2467_v43 = vsel %vm2449_vm4, %v704_v42, -1e+30 }
 0x3d2   : > { %v1983_v45 = vpop.f32.mrf.mxu1  ;;  %v1988_v46 = vpop.f32.mrf.mxu0  ;;  %v934_v47 = vsel %vm515_vm3, %v2467_v43, -inf }
 0x3d3   : > { %935 = vmax.xlane.f32.xlu0 %v934_v47 }
 0x3d4   : > { %v707_v48 = vpop.f32.mrf.mxu0  ;;  %v754_v50 = vpop.f32.mrf.mxu1 }
 0x3d5   : > { %v2473_v51 = vsel %vm2449_vm4, %v754_v50, -1e+30 }
 0x3d6   : > { %v1989_v52 = vpop.f32.mrf.mxu0  ;;  %v1994_v53 = vpop.f32.mrf.mxu1  ;;  %v937_v55 = vsel %vm515_vm3, %v2473_v51, -inf }
 0x3d7   : > { %938 = vmax.xlane.f32.xlu0 %v937_v55 }
 0x3d8   : > { %v757_v57 = vpop.f32.mrf.mxu1  ;;  %v804_v59 = vpop.f32.mrf.mxu0 }
 0x3d9   : > { %v922_v61 = vsel %vm2449_vm4, %v804_v59, -1e+30 }
 0x3da   : > { %v1995_v62 = vpop.f32.mrf.mxu1  ;;  %v2000_v63 = vpop.f32.mrf.mxu0  ;;  %v940_v0 = vsel %vm515_vm3, %v922_v61, -inf }
 0x3db   : > { %941 = vmax.xlane.f32.xlu1 %v940_v0 }
 0x3dc   : > { %v807_v1 = vpop.f32.mrf.mxu0  ;;  %v854_v2 = vpop.f32.mrf.mxu1 }
 0x3dd   : > { %v2482_v3 = vsel %vm2449_vm4, %v854_v2, -1e+30 }
 0x3de   : > { %v2001_v4 = vpop.f32.mrf.mxu0  ;;  %v2006_v5 = vpop.f32.mrf.mxu1  ;;  %v943_v6 = vsel %vm515_vm3, %v2482_v3, -inf }
 0x3df   : > { %944 = vmax.xlane.f32.xlu0 %v943_v6 }
 0x3e0   : > { %v857_v7 = vpop.f32.mrf.mxu1  ;;  %v904_v8 = vpop.f32.mrf.mxu0 }
 0x3e1   : > { %v924_v18 = vsel %vm2449_vm4, %v904_v8, -1e+30 }
 0x3e2   : > { %v2007_v9 = vpop.f32.mrf.mxu1  ;;  %v2012_v10 = vpop.f32.mrf.mxu0 }
 0x3e4   : > { %v907_v11 = vpop.f32.mrf.mxu0 }
 0x3e6   : > { %v2013_v12 = vpop.f32.mrf.mxu0 }
 0x3eb   : > { %v927_v13 = vpop.xlane.xlu0 %926 }
 0x3ec   : > { %1070 = vrot.lane.b32.xlu1 %v2363_v40, %s2235_s15  ;;  %v949_v14 = vsub.f32 %v917_v22, %v927_v13  ;;  %v946_v40 = vsel %vm515_vm3, %v924_v18, -inf }
 0x3ee   : > { %v957_v15 = vmul.f32 1.442695, %v949_v14 }
 0x3f0   : > { %1118 = vrot.lane.b32.xlu1 %v2379_v44, %s2235_s15  ;;  %2157 = vpow2.f32 %v957_v15 }
 0x3f5   : > { %1021 = vrot.lane.b32.xlu0 %v2359_v37, %s2235_s15 }
 0x3f7   : > { %v930_v37 = vpop.xlane.xlu1 %929 }
 0x3f8   : > { %v950_v44 = vsub.f32 %v918_v28, %v930_v37 }
 0x3fa   : > { %v959_v21 = vmul.f32 1.442695, %v950_v44 }
 0x3fc   : > { %2159 = vpow2.f32 %v959_v21 }
 0x3fd   : > { %v2492_v16 = vpop.eup %2157 }
 0x3fe   : > { %v973_v19 = vsel %vm515_vm3, %v2492_v16, 0.0 }
 0x409   : > { %v2501_v22 = vpop.eup %2159 }
 0x40a   : > { %v976_v20 = vsel %vm515_vm3, %v2501_v22, 0.0 }
 0x414   : > { %974 = vadd.xlane.f32.xlu0 %v973_v19  ;;  %947 = vmax.xlane.f32.xlu1 %v946_v40 }
 0x425   : > { %1166 = vrot.lane.b32.xlu1 %v2383_v49, %s2235_s15 }
 0x449   : > { %977 = vadd.xlane.f32.xlu1 %v976_v20 }
 0x458   : > { %v933_v23 = vpop.xlane.xlu0 %932 }
 0x459   : > { %v951_v24 = vsub.f32 %v2461_v36, %v933_v23 }
 0x45a   : > { %1262 = vrot.lane.b32.xlu1 %v2395_v56, %s2235_s15 }
 0x45b   : > { %v961_v25 = vmul.f32 1.442695, %v951_v24 }
 0x45c   : > { %v936_v26 = vpop.xlane.xlu0 %935 }
 0x45d   : > { %2161 = vpow2.f32 %v961_v25  ;;  %v952_v28 = vsub.f32 %v2467_v43, %v936_v26 }
 0x45f   : > { %v963_v31 = vmul.f32 1.442695, %v952_v28 }
 0x460   : > { %v939_v49 = vpop.xlane.xlu0 %938 }
 0x461   : > { %2163 = vpow2.f32 %v963_v31  ;;  %v953_v47 = vsub.f32 %v2473_v51, %v939_v49 }
 0x463   : > { %v965_v48 = vmul.f32 1.442695, %v953_v47 }
 0x464   : > { %v942_v27 = vpop.xlane.xlu1 %941 }
 0x465   : > { %v954_v32 = vsub.f32 %v922_v61, %v942_v27 }
 0x467   : > { %v967_v39 = vmul.f32 1.442695, %v954_v32 }
 0x468   : > { %v945_v29 = vpop.xlane.xlu0 %944  ;;  %v1071_v30 = vpop.permute.xlu1 %1070 }
 0x469   : > { %v1076_v35 = vsel %vm1026_vm5, %v1071_v30, 0  ;;  %2165 = vpow2.f32 %v967_v39  ;;  %v955_v50 = vsub.f32 %v2482_v3, %v945_v29 }
 0x46a   : > { %v2510_v38 = vpop.eup %2161  ;;  %2021 = vmatpush3.bf16.msra.mxu0 %v1076_v35  ;;  %2167 = vpow2.f32 %v965_v48 }
 0x46b   : > { %v979_v56 = vsel %vm515_vm3, %v2510_v38, 0.0  ;;  %2032 = vmatprep.subr.bf16.mxu0 %v2229_v17  ;;  %v969_v52 = vmul.f32 1.442695, %v955_v50 }
 0x46c   : > { %980 = vadd.xlane.f32.xlu0 %v979_v56  ;;  %v1022_v36 = vpop.permute.xlu0 %1021  ;;  %v1119_v53 = vpop.permute.xlu1 %1118 }
 0x46d   : > { %v1028_v41 = vsel %vm1026_vm5, %v1022_v36, 0  ;;  %2169 = vpow2.f32 %v969_v52  ;;  %v1124_v4 = vsel %vm1026_vm5, %v1119_v53, 0 }
 0x46e   : > { %2015 = vmatpush3.bf16.msra.mxu1 %v1028_v41  ;;  %v2517_v42 = vpop.eup %2163 }
 0x46f   : > { %2026 = vmatprep.subr.bf16.mxu1 %v2229_v17  ;;  %v982_v43 = vsel %vm515_vm3, %v2517_v42, 0.0 }
 0x476   : > { %v2521_v45 = vpop.eup %2165 }
 0x477   : > { %v988_v46 = vsel %vm515_vm3, %v2521_v45, 0.0  ;;  %v2529_v55 = vpop.eup %2167 }
 0x47a   : > { %v2533_v63 = vpop.eup %2169 }
 0x47b   : > { %v991_v51 = vsel %vm515_vm3, %v2533_v63, 0.0 }
 0x47e   : > { %983 = vadd.xlane.f32.xlu1 %v982_v43 }
 0x482   : > { %1214 = vrot.lane.b32.xlu0 %v2389_v54, %s2235_s15  ;;  %989 = vadd.xlane.f32.xlu1 %v988_v46  ;;  %v985_v54 = vsel %vm515_vm3, %v2529_v55, 0.0 }
 0x49d   : > { %v975_v57 = vpop.xlane.xlu0 %974  ;;  %v948_v59 = vpop.xlane.xlu1 %947 }
 0x49e   : > { %2171 = vrcp.f32 %v975_v57  ;;  %v956_v61 = vsub.f32 %v924_v18, %v948_v59 }
 0x4a0   : > { %v971_v62 = vmul.f32 1.442695, %v956_v61 }
 0x4a1   : > { %986 = vadd.xlane.f32.xlu0 %v985_v54  ;;  %v1167_v6 = vpop.permute.xlu1 %1166 }
 0x4a2   : > { %2173 = vpow2.f32 %v971_v62  ;;  %v1172_v11 = vsel %vm1026_vm5, %v1167_v6, 0 }
 0x4a5   : > { %992 = vadd.xlane.f32.xlu0 %v991_v51 }
 0x4ab   : > { %v2172_v0 = vpop.eup %2171 }
 0x4ac   : > { %v998_v1 = vmul.f32 %v2172_v0, %v2492_v16 }
 0x4ae   : > { %v1013_v2 = vpack.c.bf16 %v998_v1, %v998_v1 }
 0x4af   : > { %v2538_v3 = vpop.eup %2173 }
 0x4b0   : > { %2017 = vmatmul.mubr.msk.bf16.vlgmr.msra.gmra.mxu1 %vm515_vm3, %v1013_v2  ;;  %v994_v5 = vsel %vm515_vm3, %v2538_v3, 0.0 }
 0x4b1   : > { %2027 = vmatpush3.bf16.msra.mxu1 %v1124_v4  ;;  %995 = vadd.xlane.f32.xlu1 %v994_v5  ;;  %v2141_v4 = vld [vmem:[%s2310_s14 + $0x8] sm:$0xff]  }
 0x4b2   : > { %2028 = vmatprep.mubr.msk.bf16.mxu1 %vm2230_vm2, %v2229_v17  ;;  %2038 = vmatprep.subr.bf16.mxu1 %v2229_v17 }
 0x4bb   : > { %1310 = vrot.lane.b32.xlu0 %v2400_v58, %s2235_s15 }
 0x4c2   : > { %1358 = vrot.lane.b32.xlu1 %v2408_v60, %s2235_s15 }
 0x4d2   : > { %v978_v7 = vpop.xlane.xlu1 %977 }
 0x4d3   : > { %2175 = vrcp.f32 %v978_v7 }
 0x4d6   : > { %v1263_v12 = vpop.permute.xlu1 %1262 }
 0x4e0   : > { %v2176_v8 = vpop.eup %2175 }
 0x4e1   : > { %v1000_v9 = vmul.f32 %v2176_v8, %v2501_v22  ;;  %v1268_v22 = vsel %vm1026_vm5, %v1263_v12, 0 }
 0x4e3   : > { %v1014_v10 = vpack.c.bf16 %v1000_v9, %v1000_v9 }
 0x4e5   : > { %2023 = vmatmul.mubr.msk.bf16.vlgmr.msra.gmra.mxu0 %vm515_vm3, %v1014_v10  ;;  %v2142_v10 = vld [vmem:[%s2310_s14] sm:$0xff]  }
 0x4e6   : > { %2033 = vmatpush3.bf16.msra.mxu0 %v1172_v11  ;;  %2034 = vmatprep.mubr.msk.bf16.mxu0 %vm2230_vm2, %v2229_v17 }
 0x4e7   : > { %2044 = vmatprep.subr.bf16.mxu0 %v2229_v17 }
 0x4f5   : > { %v981_v58 = vpop.xlane.xlu0 %980 }
 0x4f6   : > { %2177 = vrcp.f32 %v981_v58 }
 0x4f9   : > { %v1215_v14 = vpop.permute.xlu0 %1214 }
 0x4fa   : > { %v1220_v18 = vsel %vm1026_vm5, %v1215_v14, 0 }
 0x503   : > { %v2178_v60 = vpop.eup %2177 }
 0x504   : > { %v1002_v13 = vmul.f32 %v2178_v60, %v2510_v38 }
 0x506   : > { %v1015_v15 = vpack.c.bf16 %v1002_v13, %v1002_v13 }
 0x507   : > { %v984_v16 = vpop.xlane.xlu1 %983 }
 0x508   : > { %2179 = vrcp.f32 %v984_v16  ;;  %2029 = vmatmul.mubr.msk.bf16.vlgmr.msra.gmra.mxu1 %vm515_vm3, %v1015_v15 }
 0x509   : > { %2039 = vmatpush3.bf16.msra.mxu1 %v1220_v18  ;;  %2040 = vmatprep.mubr.msk.bf16.mxu1 %vm2230_vm2, %v2229_v17 }
 0x50a   : > { %2050 = vmatprep.subr.bf16.mxu1 %v2229_v17 }
 0x50b   : > { %v990_v19 = vpop.xlane.xlu1 %989 }
 0x50c   : > { %2181 = vrcp.f32 %v990_v19 }
 0x515   : > { %v2180_v40 = vpop.eup %2179 }
 0x516   : > { %v1004_v37 = vmul.f32 %v2180_v40, %v2517_v42 }
 0x518   : > { %v1016_v44 = vpack.c.bf16 %v1004_v37, %v1004_v37 }
 0x519   : > { %v2182_v21 = vpop.eup %2181 }
 0x51a   : > { %2035 = vmatmul.mubr.msk.bf16.vlgmr.msra.gmra.mxu0 %vm515_vm3, %v1016_v44  ;;  %v1008_v20 = vmul.f32 %v2182_v21, %v2521_v45 }
 0x51b   : > { %2045 = vmatpush3.bf16.msra.mxu0 %v1268_v22  ;;  %2046 = vmatprep.mubr.msk.bf16.mxu0 %vm2230_vm2, %v2229_v17 }
 0x51c   : > { %2056 = vmatprep.subr.bf16.mxu0 %v2229_v17  ;;  %v1018_v23 = vpack.c.bf16 %v1008_v20, %v1008_v20 }
 0x522   : > { %2047 = vmatmul.mubr.msk.bf16.vlgmr.msra.gmra.mxu0 %vm515_vm3, %v1018_v23 }
 0x523   : > { %2058 = vmatprep.mubr.msk.bf16.mxu0 %vm2230_vm2, %v2229_v17 }
 0x52a   : > { %v987_v24 = vpop.xlane.xlu0 %986 }
 0x52b   : > { %2183 = vrcp.f32 %v987_v24 }
 0x52e   : > { %v993_v25 = vpop.xlane.xlu0 %992 }
 0x52f   : > { %2185 = vrcp.f32 %v993_v25 }
 0x532   : > { %v1311_v27 = vpop.permute.xlu0 %1310 }
 0x533   : > { %v1316_v31 = vsel %vm1026_vm5, %v1311_v27, 0 }
 0x538   : > { %v2184_v26 = vpop.eup %2183 }
 0x539   : > { %v1006_v49 = vmul.f32 %v2184_v26, %v2529_v55 }
 0x53a   : > { %v996_v28 = vpop.xlane.xlu1 %995 }
 0x53b   : > { %2187 = vrcp.f32 %v996_v28  ;;  %v1017_v29 = vpack.c.bf16 %v1006_v49, %v1006_v49 }
 0x53c   : > { %v2186_v30 = vpop.eup %2185 }
 0x53d   : > { %2041 = vmatmul.mubr.msk.bf16.vlgmr.msra.gmra.mxu1 %vm515_vm3, %v1017_v29  ;;  %v1010_v38 = vmul.f32 %v2186_v30, %v2533_v63 }
 0x53e   : > { %2051 = vmatpush3.bf16.msra.mxu1 %v1316_v31  ;;  %v1359_v32 = vpop.permute.xlu1 %1358  ;;  %2052 = vmatprep.mubr.msk.bf16.mxu1 %vm2230_vm2, %v2229_v17  ;;  %v1877_v31 = vld [vmem:[%s2300_s8 + $0x2] ss:$0 sm:$0xff] }
 0x53f   : > { %v1364_v35 = vsel %vm1026_vm5, %v1359_v32, 0  ;;  %2062 = vmatprep.subr.bf16.mxu1 %v2229_v17  ;;  %v1019_v56 = vpack.c.bf16 %v1010_v38, %v1010_v38 }
 0x540   : > { %2057 = vmatpush3.bf16.msra.mxu0 %v1364_v35 }
 0x541   : > { %2070 = vmatprep.subr.bf16.mxu0 %v2229_v17 }
 0x545   : > { %2053 = vmatmul.mubr.msk.bf16.vlgmr.msra.gmra.mxu1 %vm515_vm3, %v1019_v56 }
 0x546   : > { %2066 = vmatprep.mubr.msk.bf16.mxu1 %vm2230_vm2, %v2229_v17  ;;  %2063 = vmatpush3.bf16.msra.mxu1 %v2141_v4 }
 0x547   : > { %2064 = vmatprep.subr.bf16.mxu1 %v2229_v17 }
 0x548   : > { %v2188_v36 = vpop.eup %2187 }
 0x549   : > { %v1012_v39 = vmul.f32 %v2188_v36, %v2538_v3 }
 0x54a   : > { %2065 = vmatpush3.bf16.msra.mxu1 %v2142_v10 }
 0x54b   : > { %v1020_v41 = vpack.c.bf16 %v1012_v39, %v1012_v39  ;;  %2078 = vmatprep.subr.bf16.mxu1 %v2229_v17 }
 0x54d   : > { %2059 = vmatmul.mubr.msk.bf16.vlgmr.msra.gmra.mxu0 %vm515_vm3, %v1020_v41 }
 0x54e   : > { %2074 = vmatprep.mubr.msk.bf16.mxu0 %vm2230_vm2, %v2229_v17 }
 0x570   : > { %v1064_v42 = vpop.f32.mrf.mxu1 }
 0x572   : > { %v2018_v43 = vpop.f32.mrf.mxu1 }
 0x574   : > { %v1067_v45 = vpop.f32.mrf.mxu1 }
 0x576   : > { %v2019_v46 = vpop.f32.mrf.mxu1 }
 0x5a5   : > { %v1112_v47 = vpop.f32.mrf.mxu0 }
 0x5a7   : > { %v2024_v48 = vpop.f32.mrf.mxu0 }
 0x5a9   : > { %v1115_v50 = vpop.f32.mrf.mxu0 }
 0x5ab   : > { %v2025_v52 = vpop.f32.mrf.mxu0 }
 0x5c8   : > { %v1160_v53 = vpop.f32.mrf.mxu1 }
 0x5ca   : > { %v2030_v55 = vpop.f32.mrf.mxu1 }
 0x5cc   : > { %v1163_v57 = vpop.f32.mrf.mxu1 }
 0x5ce   : > { %v2031_v59 = vpop.f32.mrf.mxu1 }
 0x5cf   : > { %v2143_v59 = vld [vmem:[%s2315_s17 + $0x8] sm:$0xff]  }
 0x5d0   : > { %2071 = vmatpush3.bf16.msra.mxu0 %v2143_v59 }
 0x5d1   : > { %2072 = vmatprep.subr.bf16.mxu0 %v2229_v17 }
 0x5da   : > { %v1208_v61 = vpop.f32.mrf.mxu0 }
 0x5db   : > { %v2124_v62 = vpack.i.bf16 %v1208_v61, %v1160_v53  ;;  %v2144_v61 = vld [vmem:[%s2315_s17] sm:$0xff]  }
 0x5dc   : > { %v2036_v54 = vpop.f32.mrf.mxu0  ;;  %2073 = vmatpush3.bf16.msra.mxu0 %v2144_v61 }
 0x5dd   : > { %2125 = vrot.lane.b32.xlu0 %v2124_v62, %s2236_s16  ;;  %v2145_v62 = vld [vmem:[%s2325_s27 + $0x38] sm:$0xff]   ;;  %v2146_v54 = vld [vmem:[%s2325_s27 + $0x30] sm:$0xff]  }
 0x5de   : > { %v1211_v63 = vpop.f32.mrf.mxu0 }
 0x5df   : > { %v2147_v63 = vld [vmem:[%s2325_s27 + $0x28] sm:$0xff]  }
 0x5e0   : > { %v2037_v51 = vpop.f32.mrf.mxu0 }
 0x5e1   : > { %v2148_v51 = vld [vmem:[%s2325_s27 + $0x20] sm:$0xff]  }
 0x5e2   : > { %v1304_v0 = vpop.f32.mrf.mxu0 }
 0x5e4   : > { %v2048_v1 = vpop.f32.mrf.mxu0 }
 0x5e6   : > { %v1307_v2 = vpop.f32.mrf.mxu0 }
 0x5e8   : > { %v2049_v3 = vpop.f32.mrf.mxu0 }
 0x5fd   : > { %v1256_v5 = vpop.f32.mrf.mxu1 }
 0x5fe   : > { %v2129_v6 = vpack.i.bf16 %v1304_v0, %v1256_v5  ;;  %v2149_v0 = vld [vmem:[%s2325_s27 + $0x18] sm:$0xff]  }
 0x5ff   : > { %v2042_v7 = vpop.f32.mrf.mxu1 }
 0x600   : > { %2130 = vrot.lane.b32.xlu1 %v2129_v6, %s2237_s18 }
 0x601   : > { %v1259_v8 = vpop.f32.mrf.mxu1 }
 0x603   : > { %v2043_v9 = vpop.f32.mrf.mxu1 }
 0x604   : > { %v1881_v9 = vld [vmem:[%s2300_s8 + $0x3] ss:$0 sm:$0xff] }
 0x605   : > { %v1352_v11 = vpop.f32.mrf.mxu1 }
 0x607   : > { %v2054_v58 = vpop.f32.mrf.mxu1 }
 0x609   : > { %v1355_v60 = vpop.f32.mrf.mxu1 }
 0x60a   : > { %v1882_v60 = vld [vmem:[%s2300_s8 + $0x4] ss:$0 sm:$0xff] }
 0x60b   : > { %v2055_v12 = vpop.f32.mrf.mxu1 }
 0x60d   : > { %v1400_v13 = vpop.f32.mrf.mxu0 }
 0x60e   : > { %v2134_v14 = vpack.i.bf16 %v1400_v13, %v1352_v11 }
 0x60f   : > { %v2060_v15 = vpop.f32.mrf.mxu0 }
 0x610   : > { %2135 = vrot.lane.b32.xlu0 %v2134_v14, %s2238_s19 }
 0x611   : > { %v1403_v16 = vpop.f32.mrf.mxu0 }
 0x612   : > { %v2150_v16 = vld [vmem:[%s2325_s27 + $0x10] sm:$0xff]  }
 0x613   : > { %v2061_v18 = vpop.f32.mrf.mxu0 }
 0x614   : > { %v2151_v18 = vld [vmem:[%s2325_s27 + $0x8] sm:$0xff]  }
 0x64f   : > { %v2126_v19 = vpop.permute.xlu0 %2125 }
 0x650   : > { %v2128_v37 = vunpack.i.h.bf16 %v2126_v19  ;;  %v2127_v44 = vunpack.i.l.bf16 %v2126_v19  ;;  %v2152_v19 = vld [vmem:[%s2325_s27] sm:$0xff]  }
 0x652   : > { %v1431_v23 = vsel %vm515_vm3, %v1112_v47, %v2128_v37  ;;  %v1430_v24 = vsel %vm515_vm3, %v1064_v42, %v2127_v44 }
 0x672   : > { %v2131_v40 = vpop.permute.xlu1 %2130 }
 0x673   : > { %v2133_v21 = vunpack.i.h.bf16 %v2131_v40  ;;  %v2132_v22 = vunpack.i.l.bf16 %v2131_v40  ;;  %v1883_v40 = vld [vmem:[%s350_s20] ss:$0 sm:$0xff]  ;;  %s1733_s20 = sshll.u32 %s2239_s26, 4  ;;  %s1734_s20 = int_to_ptr.vmem [resolvable:$true] %s1733_s20 }
 0x674   : > { %s2193_s21 = scalar_lea.vmem %s1734_s20, 256  ;;  %p2200_p9 = scmp.lt.s32.totalorder %s1734_s20, %s1734_s20 }
 0x675   : > { %v1434_v49 = vsel %vm1432_vm6, %v1431_v23, %v2133_v21  ;;  %v1433_v27 = vsel %vm1432_vm6, %v1430_v24, %v2132_v22  ;;  %p2194_p6 = scmp.ne.s32.totalorder %s1734_s20, %s2193_s21  ;;  %p2201_p10 = scmp.lt.s32.totalorder %s2193_s21, %s2193_s21 }
 0x677   : > { %p2195_p7 = pnand %p2194_p6, %p2102_p5  ;;  %p2202_p11 = por %p2201_p10, %p2200_p9 }
 0x679   : > { %p2196_p8 = pneg %p2195_p7 }
 0x67b   : > { %p2203_p12 = pnand %p2202_p11, %p2196_p8 }
 0x682   : > { %v2136_v20 = vpop.permute.xlu0 %2135 }
 0x683   : > { %v2138_v25 = vunpack.i.h.bf16 %v2136_v20  ;;  %v2137_v26 = vunpack.i.l.bf16 %v2136_v20 }
 0x685   : > { %v1437_v28 = vsel %vm1435_vm7, %v1434_v49, %v2138_v25  ;;  %v1436_v29 = vsel %vm1435_vm7, %v1433_v27, %v2137_v26  ;;  %v1887_v49 = vld [vmem:[%s2300_s8 + $0x5] ss:$0 sm:$0xff] }
 0x686   : > { %v1438_v30 = vpack.c.bf16 %v1437_v28, %v1436_v29 }
 0x688   : > { %2067 = vmatmul.mubr.msk.bf16.vlgmr.msra.gmra.mxu1 %vm374_vm1, %v1438_v30 }
 0x689   : > { %2094 = vmatprep.mubr.msk.bf16.mxu1 %vm2230_vm2, %v2229_v17  ;;  %2079 = vmatpush3.bf16.msra.mxu1 %v2145_v62 }
 0x68a   : > { %2080 = vmatprep.subr.bf16.mxu1 %v2229_v17 }
 0x68d   : > { %2081 = vmatpush3.bf16.msra.mxu1 %v2146_v54 }
 0x68e   : > { %2082 = vmatprep.subr.bf16.mxu1 %v2229_v17 }
 0x691   : > { %2083 = vmatpush3.bf16.msra.mxu1 %v2147_v63 }
 0x692   : > { %2084 = vmatprep.subr.bf16.mxu1 %v2229_v17 }
 0x695   : > { %2085 = vmatpush3.bf16.msra.mxu1 %v2148_v51 }
 0x696   : > { %2086 = vmatprep.subr.bf16.mxu1 %v2229_v17 }
 0x699   : > { %2087 = vmatpush3.bf16.msra.mxu1 %v2149_v0 }
 0x69a   : > { %2088 = vmatprep.subr.bf16.mxu1 %v2229_v17 }
 0x69d   : > { %2089 = vmatpush3.bf16.msra.mxu1 %v2150_v16 }
 0x69e   : > { %2090 = vmatprep.subr.bf16.mxu1 %v2229_v17 }
 0x6a1   : > { %2091 = vmatpush3.bf16.msra.mxu1 %v2151_v18 }
 0x6a2   : > { %2092 = vmatprep.subr.bf16.mxu1 %v2229_v17 }
 0x6a5   : > { %2093 = vmatpush3.bf16.msra.mxu1 %v2152_v19 }
 0x748   : > { %v1496_v32 = vpop.f32.mrf.mxu1 }
 0x749   : > { %v1497_v35 = vadd.f32 %v1877_v31, %v1496_v32 }
 0x74a   : > { %v2068_v38 = vpop.f32.mrf.mxu1 }
 0x74b   : > { %v1503_v56 = vadd.f32 %v1497_v35, %v2350_v33 }
 0x74c   : > { %v1499_v36 = vpop.f32.mrf.mxu1 }
 0x74d   : > { %v1500_v39 = vadd.f32 %v1877_v31, %v1499_v36  ;;  %v1505_v41 = vsel %vm374_vm1, %v1503_v56, 0.0 }
 0x74e   : > { %1506 = vadd.xlane.f32.xlu1 %v1505_v41  ;;  %v2069_v42 = vpop.f32.mrf.mxu1 }
 0x74f   : > { %v1504_v43 = vadd.f32 %v1500_v39, %v2352_v34 }
 0x751   : > { %v1508_v45 = vsel %vm374_vm1, %v1504_v43, 0.0 }
 0x752   : > { %1509 = vadd.xlane.f32.xlu0 %v1508_v45 }
 0x7d7   : > { %v1507_v46 = vpop.xlane.xlu1 %1506 }
 0x7d8   : > { %v1511_v47 = vmul.f32 0.03125, %v1507_v46 }
 0x7da   : > { %v1513_v48 = vsub.f32 %v1503_v56, %v1511_v47 }
 0x7db   : > { %v1510_v50 = vpop.xlane.xlu0 %1509 }
 0x7dc   : > { %v1512_v33 = vmul.f32 0.03125, %v1510_v50  ;;  %v1515_v52 = vmul.f32 %v1513_v48, %v1513_v48 }
 0x7de   : > { %v1514_v53 = vsub.f32 %v1504_v43, %v1512_v33  ;;  %v1517_v55 = vsel %vm374_vm1, %v1515_v52, 0.0 }
 0x7df   : > { %1518 = vadd.xlane.f32.xlu0 %v1517_v55 }
 0x7e0   : > { %v1516_v57 = vmul.f32 %v1514_v53, %v1514_v53 }
 0x7e2   : > { %v1520_v34 = vsel %vm374_vm1, %v1516_v57, 0.0 }
 0x7e3   : > { %1521 = vadd.xlane.f32.xlu0 %v1520_v34 }
 0x868   : > { %v1519_v1 = vpop.xlane.xlu0 %1518 }
 0x869   : > { %v1523_v2 = vmul.f32 0.03125, %v1519_v1 }
 0x86b   : > { %v1525_v3 = vadd.f32 1e-05, %v1523_v2 }
 0x86c   : > { %v1522_v4 = vpop.xlane.xlu0 %1521 }
 0x86d   : > { %2189 = vrsqrt.f32 %v1525_v3  ;;  %v1524_v5 = vmul.f32 0.03125, %v1522_v4 }
 0x86f   : > { %v1526_v6 = vadd.f32 1e-05, %v1524_v5 }
 0x871   : > { %2191 = vrsqrt.f32 %v1526_v6 }
 0x87a   : > { %v2190_v7 = vpop.eup %2189 }
 0x87b   : > { %v1529_v8 = vmul.f32 %v2190_v7, %v1513_v48 }
 0x87d   : > { %v1535_v58 = vmul.f32 %v1881_v9, %v1529_v8 }
 0x87e   : > { %v2192_v10 = vpop.eup %2191 }
 0x87f   : > { %v1530_v11 = vmul.f32 %v2192_v10, %v1514_v53  ;;  %v1541_v13 = vadd.f32 %v1882_v60, %v1535_v58 }
 0x881   : > { %v1536_v12 = vmul.f32 %v1881_v9, %v1530_v11 }
 0x883   : > { %v1542_v14 = vadd.f32 %v1882_v60, %v1536_v12 }
 0x885   : > { %v1543_v15 = vpack.c.bf16 %v1542_v14, %v1541_v13 }
 0x887   : > { %2075 = vmatmul.mubr.msk.bf16.vlgmr.msra.gmra.mxu0 %vm374_vm1, %v1543_v15 }
 0x947   : > { %v1604_v37 = vpop.f32.mrf.mxu0 }
 0x948   : > { %v1605_v21 = vadd.f32 %v1883_v40, %v1604_v37 }
 0x949   : > { %v2076_v44 = vpop.f32.mrf.mxu0 }
 0x94a   : > { %v1611_v24 = vmax.f32 %v1605_v21, 0.0 }
 0x94b   : > { %v1607_v22 = vpop.f32.mrf.mxu0 }
 0x94c   : > { %v1608_v20 = vadd.f32 %v1883_v40, %v1607_v22 }
 0x94d   : > { %v2077_v23 = vpop.f32.mrf.mxu0 }
 0x94e   : > { %v1612_v25 = vmax.f32 %v1608_v20, 0.0 }
 0x950   : > { %v1613_v26 = vpack.c.bf16 %v1612_v25, %v1611_v24 }
 0x952   : > { %2095 = vmatmul.mubr.bf16.vlgmr.msra.gmra.mxu1 %v1613_v26 }
 0xa12   : > { %v1716_v17 = vpop.f32.mrf.mxu1 }
 0xa13   : > { %v1717_v27 = vadd.f32 %v1887_v49, %v1716_v17 }
 0xa14   : > { %v2096_v28 = vpop.f32.mrf.mxu1 }
 0xa15   : > { %v1723_v29 = vadd.f32 %v1717_v27, %v1541_v13 }
 0xa16   : > { %v1719_v30 = vpop.f32.mrf.mxu1 }
 0xa17   : > { %1725 = vst.msk [vmem:[#allocation2] sm:$0xff] %vm374_vm1, %v1723_v29  ;;  %v1720_v31 = vadd.f32 %v1887_v49, %v1719_v30 }
 0xa18   : > { %v2097_v32 = vpop.f32.mrf.mxu1 }
 0xa19   : > { %v1724_v35 = vadd.f32 %v1720_v31, %v1542_v14 }
 0xa1b   : > { %1726 = vst.msk [vmem:[#allocation2 + $0x8] sm:$0xff] %vm374_vm1, %v1724_v35 }
 0xa1c   : > { %2206 = shalt.err (!%p2203_p12)
}
 0xa1d   : > { %s2240_s8 = smov 128  }
 0xa1e   : > { %2099 = dma.vmem_to_hbm [thread:$0]  (%p2102_p5), %s1734_s20, 256, %s2658_s7, [#allocation3], %s2240_s8, %s2240_s8, %s2236_s16  }
 0xa1f   : > { %2222 = dma.done.wait (%p2102_p5), [#allocation3], 256  }
 0xa20   : > { %2224 = vsyncadd (%p2102_p5), [#allocation3], 4294967040 }
 0xa21 PF: > { %s18_s24 = sadd.s32 1, %s2227_s24  }
 0xa22   : > { %p15_p13 = scmp.ge.s32.totalorder %s18_s24, 4  }
 0xa24   :  { %17 = sbr.rel (!%p15_p13) target bundleno = 1 (0x1), region = 94 }
 0xa29   :  { %1749 = vsyncpa [#allocation3], 1 }
 0xa2a   :  { %1751 = vsyncpa [#allocation3 + $0x1], 1 }

</bundles_post_ra>
